<compile_context>
chip_gen: v7x
topology: tpu7x:2x2x1
jax: 0.10.0
libtpu: 0.0.40
codegen_flags: <defaults>
</compile_context>

<pallas_src>
import functools

import jax
import jax.numpy as jnp
from jax.experimental import pallas as pl
from jax.experimental.pallas import tpu as pltpu

LN_EPS = 1e-5


def _round_up(a, m):
    return (a + m - 1) // m * m


def _pack_factor(dim_in, dim_out):
    """Smallest row-packing factor that makes both packed widths lane-dense."""
    for p in (1, 2, 4, 8):
        if (p * dim_in) % 128 == 0 and (p * dim_out) % 128 == 0:
            return p
    for p in (1, 2, 4, 8):
        if (p * dim_out) % 128 == 0:
            return p
    return 1


# --------------------------------------------------------------------------- #
# Kernel
# --------------------------------------------------------------------------- #
def res_layer_kernel(x_ref, w1_ref, b1_ref, w2_ref, b2_ref, m_ref,
                     g1_ref, be1_ref, g2_ref, be2_ref, o_ref):
    pk_out = w2_ref.shape[0]           # P * dim_out (packed feature width)
    mm_dt = w1_ref.dtype               # matmul operand dtype (bf16 or f32)

    x = x_ref[...].astype(mm_dt)       # packed rows: (tp, P*dim_in)

    # Fused fc0||fc1 on packed rows (block-diagonal weights); accumulate in f32.
    # Split between residual and fc1 halves is at a 128-lane tile boundary.
    hc = jnp.dot(x, w1_ref[...], preferred_element_type=jnp.float32) + b1_ref[...]
    x_res = hc[:, :pk_out]             # packed fc0(x)   (residual branch)
    h = hc[:, pk_out:]                 # packed fc1(x)

    m = m_ref[...]                     # block-diag segment-mean matrix (f32)

    # LayerNorm1: per original row (= per 64-lane segment), mean-centred var.
    mu = jnp.dot(h, m, preferred_element_type=jnp.float32)
    hm = h - mu
    var = jnp.dot(hm * hm, m, preferred_element_type=jnp.float32)
    h = hm * jax.lax.rsqrt(var + LN_EPS) * g1_ref[...] + be1_ref[...]
    h = jnp.maximum(h, 0.0)            # ReLU

    # fc2 (block-diagonal) -> LayerNorm2
    h = jnp.dot(h.astype(mm_dt), w2_ref[...],
                preferred_element_type=jnp.float32) + b2_ref[...]
    mu = jnp.dot(h, m, preferred_element_type=jnp.float32)
    hm = h - mu
    var = jnp.dot(hm * hm, m, preferred_element_type=jnp.float32)
    h = hm * jax.lax.rsqrt(var + LN_EPS) * g2_ref[...] + be2_ref[...]

    # dropout(p=0.0) == identity
    o_ref[...] = (h + x_res).astype(o_ref.dtype)


# --------------------------------------------------------------------------- #
# Wrapper
# --------------------------------------------------------------------------- #
@functools.partial(jax.jit, static_argnames=("tile_rows",))
def res_layer_forward(x, prep, tile_rows=4096):
    """x: (B, N, dim_in) or (N, dim_in). Returns same leading shape with dim_out."""
    if x.ndim < 2 or x.ndim > 3:
        raise ValueError("x.shape should be (B, N, D) or (N, D)")
    orig_shape = x.shape
    dim_in = orig_shape[-1]

    pk_in = prep["w1"].shape[0]        # P * dim_in
    pk_out = prep["w2"].shape[0]       # P * dim_out
    P = pk_in // dim_in
    dim_out = pk_out // P

    x2d = x.reshape(-1, dim_in)
    R = x2d.shape[0]

    # Align row count to the packing factor and to >= one 8-sublane packed tile.
    # For typical R this is a no-op; otherwise it pads < 8*P rows (tiny copy).
    R_al = max(_round_up(R, P), 8 * P)
    if R_al != R:
        x2d = jnp.pad(x2d, ((0, R_al - R), (0, 0)))
    Rp = R_al // P

    # Free, contiguous (byte-identical) reshape into the lane-dense packed layout.
    xp = x2d.reshape(Rp, pk_in)

    # Packed-row tile: as large as requested for DMA amortization, but capped so
    # a large problem still yields a >=2-step grid (keeps both v7x TCs busy).
    tp_want = max(8, _round_up(max(1, tile_rows // P), 8))
    tp = max(8, min(tp_want, _round_up(pl.cdiv(Rp, 2), 8)))
    grid = (pl.cdiv(Rp, tp),)          # partial final block is masked by Pallas

    full = lambda a: pl.BlockSpec(a.shape, lambda i: (0, 0))

    out = pl.pallas_call(
        res_layer_kernel,
        out_shape=jax.ShapeDtypeStruct((Rp, pk_out), x.dtype),
        grid_spec=pltpu.PrefetchScalarGridSpec(
            num_scalar_prefetch=0,
            grid=grid,
            in_specs=[
                pl.BlockSpec((tp, pk_in), lambda i: (i, 0)),   # packed x tile
                full(prep["w1"]), full(prep["b1"]),            # fused fc0||fc1 (block-diag)
                full(prep["w2"]), full(prep["b2"]),            # fc2 (block-diag)
                full(prep["mseg"]),                            # segment-mean matrix
                full(prep["g1"]), full(prep["be1"]),           # ln1 affine (packed)
                full(prep["g2"]), full(prep["be2"]),           # ln2 affine (packed)
            ],
            out_specs=pl.BlockSpec((tp, pk_out), lambda i: (i, 0)),
        ),
        compiler_params=pltpu.CompilerParams(
            dimension_semantics=("parallel",),
            vmem_limit_bytes=32 * 1024 * 1024,
        ),
    )(xp, prep["w1"], prep["b1"], prep["w2"], prep["b2"], prep["mseg"],
      prep["g1"], prep["be1"], prep["g2"], prep["be2"])

    # Free reshape back to (rows, dim_out); drop alignment rows if any.
    out2d = out.reshape(R_al, dim_out)
    if R_al != R:
        out2d = out2d[:R]
    return out2d.reshape(orig_shape[:-1] + (dim_out,))


# --------------------------------------------------------------------------- #
# Parameter setup (done once, outside the jitted forward)
# --------------------------------------------------------------------------- #
def init_params(key, dim_in, dim_out, dtype=jnp.float32):
    """Deterministic synthetic params. Linear weights stored pre-transposed (in, out)."""
    ks = jax.random.split(key, 6)

    def lin(kw, kb, fan_in, fan_out):
        bound = 1.0 / jnp.sqrt(fan_in)
        w = jax.random.uniform(kw, (fan_in, fan_out), dtype, -bound, bound)
        b = jax.random.uniform(kb, (1, fan_out), dtype, -bound, bound)
        return w, b

    w0, b0 = lin(ks[0], ks[1], dim_in, dim_out)
    w1, b1 = lin(ks[2], ks[3], dim_in, dim_out)
    w2, b2 = lin(ks[4], ks[5], dim_out, dim_out)
    # torch.nn.LayerNorm default affine init: ones / zeros.
    g1 = jnp.ones((1, dim_out), dtype); be1 = jnp.zeros((1, dim_out), dtype)
    g2 = jnp.ones((1, dim_out), dtype); be2 = jnp.zeros((1, dim_out), dtype)
    return dict(w0=w0, b0=b0, w1=w1, b1=b1, w2=w2, b2=b2,
                g1=g1, be1=be1, g2=g2, be2=be2)


def prepare_params(params, matmul_dtype=jnp.bfloat16):
    """One-time fuse/pack of the raw params into the block-diagonal, lane-dense
    form the kernel consumes. Weights are cast to the matmul operand dtype;
    biases / LN params / segment-mean matrix stay f32."""
    dim_in, dim_out = params["w0"].shape
    P = _pack_factor(dim_in, dim_out)
    eye = jnp.eye(P, dtype=jnp.float32)
    f32 = lambda a: a.astype(jnp.float32)
    tile = lambda a: jnp.tile(f32(a), (1, P))         # (1, P*dim_out)

    w0bd = jnp.kron(eye, f32(params["w0"]))           # (P*din, P*dout)
    w1bd = jnp.kron(eye, f32(params["w1"]))           # (P*din, P*dout)
    w2bd = jnp.kron(eye, f32(params["w2"]))           # (P*dout, P*dout)
    mseg = jnp.kron(eye, jnp.full((dim_out, dim_out), 1.0 / dim_out, jnp.float32))

    return dict(
        w1=jnp.concatenate([w0bd, w1bd], axis=1).astype(matmul_dtype),
        b1=jnp.concatenate([tile(params["b0"]), tile(params["b1"])], axis=1),
        w2=w2bd.astype(matmul_dtype),
        b2=tile(params["b2"]),
        mseg=mseg,
        g1=tile(params["g1"]), be1=tile(params["be1"]),
        g2=tile(params["g2"]), be2=tile(params["be2"]),
    )


# --------------------------------------------------------------------------- #
# Pure-JAX reference (PyTorch eval semantics)
# --------------------------------------------------------------------------- #
def res_layer_ref(x, p, matmul_dtype=jnp.float32):
    hp = jax.lax.Precision.HIGHEST
    c = lambda a: a.astype(matmul_dtype).astype(jnp.float32)

    def ln(h, g, b):
        mu = h.mean(-1, keepdims=True)
        var = ((h - mu) ** 2).mean(-1, keepdims=True)
        return (h - mu) / jnp.sqrt(var + LN_EPS) * g[0] + b[0]

    xm = c(x)
    x_res = jnp.dot(xm, c(p["w0"]), precision=hp) + p["b0"][0]
    h = ln(jnp.dot(xm, c(p["w1"]), precision=hp) + p["b1"][0], p["g1"], p["be1"])
    h = jax.nn.relu(h)
    h = ln(jnp.dot(c(h), c(p["w2"]), precision=hp) + p["b2"][0], p["g2"], p["be2"])
    return h + x_res


if __name__ == "__main__":
    key = jax.random.PRNGKey(0)
    k1, k2, k3, kp = jax.random.split(key, 4)

    dim_in, dim_out = 32, 64
    params = init_params(kp, dim_in, dim_out)
    prep_bf16 = prepare_params(params, matmul_dtype=jnp.bfloat16)   # default perf config
    prep_f32 = prepare_params(params, matmul_dtype=jnp.float32)     # full-precision operands

    # 1) Small (B, N, D) case, bf16 matmul operands (single-tile grid).
    B, N = 2, 16
    x = jax.random.normal(k1, (B, N, dim_in), jnp.float32)
    y = jax.block_until_ready(res_layer_forward(x, prep_bf16))
    y_ref = res_layer_ref(x, params, jnp.bfloat16)
    assert y.shape == (B, N, dim_out)
    assert jnp.allclose(y, y_ref, atol=2e-2, rtol=2e-2), "mismatch vs reference (3D/bf16)"

    # 2) Ragged (N, D) case, f32 operands, small tile -> 2-step grid with a
    #    masked partial final block.
    N2 = 300
    x2 = jax.random.normal(k2, (N2, dim_in), jnp.float32)
    y2 = jax.block_until_ready(res_layer_forward(x2, prep_f32, tile_rows=512))
    y2_ref = res_layer_ref(x2, params)
    assert y2.shape == (N2, dim_out)
    assert jnp.allclose(y2, y2_ref, atol=2e-2, rtol=2e-2), "mismatch vs reference (2D/f32)"

    # 3) Larger row count at the default (perf) tiling: 2-step parallel grid.
    N3 = 8192
    x3 = jax.random.normal(k3, (N3, dim_in), jnp.float32)
    y3 = jax.block_until_ready(res_layer_forward(x3, prep_bf16))
    y3_ref = res_layer_ref(x3, params, jnp.bfloat16)
    assert y3.shape == (N3, dim_out)
    assert jnp.allclose(y3, y3_ref, atol=2e-2, rtol=2e-2), "mismatch vs reference (large/bf16)"

    print("KERNEL_OK")
</pallas_src>

<mosaic_0001>
module attributes {stable_mosaic.version = 11 : i64} {
  func.func @res_layer_kernel(%arg0: i32, %arg1: memref<8x128xf32, #tpu.memory_space<vmem>>, %arg2: memref<128x512xbf16, #tpu.memory_space<vmem>>, %arg3: memref<1x512xf32, #tpu.memory_space<vmem>>, %arg4: memref<256x256xbf16, #tpu.memory_space<vmem>>, %arg5: memref<1x256xf32, #tpu.memory_space<vmem>>, %arg6: memref<256x256xf32, #tpu.memory_space<vmem>>, %arg7: memref<1x256xf32, #tpu.memory_space<vmem>>, %arg8: memref<1x256xf32, #tpu.memory_space<vmem>>, %arg9: memref<1x256xf32, #tpu.memory_space<vmem>>, %arg10: memref<1x256xf32, #tpu.memory_space<vmem>>, %arg11: memref<8x256xf32, #tpu.memory_space<vmem>>) attributes {dimension_semantics = [#tpu.dimension_semantics<parallel>], iteration_bounds = array<i64: 1>, scalar_prefetch = 0 : i64, scratch_operands = 0 : i64, tpu.core_type = #tpu.core_type<tc>, window_params = [{transform_indices = @transform_0, window_bounds = array<i64: 8, 128>}, {pipeline_mode = #tpu.pipeline_mode<synchronous>, transform_indices = @transform_1, window_bounds = array<i64: 128, 512>}, {pipeline_mode = #tpu.pipeline_mode<synchronous>, transform_indices = @transform_2, window_bounds = array<i64: 1, 512>}, {pipeline_mode = #tpu.pipeline_mode<synchronous>, transform_indices = @transform_3, window_bounds = array<i64: 256, 256>}, {pipeline_mode = #tpu.pipeline_mode<synchronous>, transform_indices = @transform_4, window_bounds = array<i64: 1, 256>}, {pipeline_mode = #tpu.pipeline_mode<synchronous>, transform_indices = @transform_5, window_bounds = array<i64: 256, 256>}, {pipeline_mode = #tpu.pipeline_mode<synchronous>, transform_indices = @transform_6, window_bounds = array<i64: 1, 256>}, {pipeline_mode = #tpu.pipeline_mode<synchronous>, transform_indices = @transform_7, window_bounds = array<i64: 1, 256>}, {pipeline_mode = #tpu.pipeline_mode<synchronous>, transform_indices = @transform_8, window_bounds = array<i64: 1, 256>}, {pipeline_mode = #tpu.pipeline_mode<synchronous>, transform_indices = @transform_9, window_bounds = array<i64: 1, 256>}, {transform_indices = @transform_10, window_bounds = array<i64: 8, 256>}]} {
    %c0 = arith.constant 0 : index
    %c0_0 = arith.constant 0 : index
    %0 = vector.load %arg1[%c0, %c0_0] : memref<8x128xf32, #tpu.memory_space<vmem>>, vector<8x128xf32>
    %1 = arith.truncf %0 : vector<8x128xf32> to vector<8x128xbf16>
    %c0_1 = arith.constant 0 : index
    %c0_2 = arith.constant 0 : index
    %2 = vector.load %arg2[%c0_1, %c0_2] : memref<128x512xbf16, #tpu.memory_space<vmem>>, vector<128x512xbf16>
    %cst = arith.constant dense<0.000000e+00> : vector<8x512xf32>
    %3 = tpu.matmul %1, %2, %cst {dimension_numbers = #tpu.dot_dimension_numbers<[1], [0], [0], [1], [0, 0, 1, 1], [], []>} : vector<8x128xbf16>, vector<128x512xbf16>, vector<8x512xf32> -> vector<8x512xf32>
    %c0_3 = arith.constant 0 : index
    %c0_4 = arith.constant 0 : index
    %4 = vector.load %arg3[%c0_3, %c0_4] : memref<1x512xf32, #tpu.memory_space<vmem>>, vector<1x512xf32>
    %5 = vector.broadcast %4 : vector<1x512xf32> to vector<8x512xf32>
    %6 = arith.addf %3, %5 : vector<8x512xf32>
    %7 = vector.extract_strided_slice %6 {offsets = [0, 0], sizes = [8, 256], strides = [1, 1]} : vector<8x512xf32> to vector<8x256xf32>
    %8 = vector.extract_strided_slice %6 {offsets = [0, 256], sizes = [8, 256], strides = [1, 1]} : vector<8x512xf32> to vector<8x256xf32>
    %c0_5 = arith.constant 0 : index
    %c0_6 = arith.constant 0 : index
    %9 = vector.load %arg6[%c0_5, %c0_6] : memref<256x256xf32, #tpu.memory_space<vmem>>, vector<256x256xf32>
    %cst_7 = arith.constant dense<0.000000e+00> : vector<8x256xf32>
    %10 = tpu.matmul %8, %9, %cst_7 {dimension_numbers = #tpu.dot_dimension_numbers<[1], [0], [0], [1], [0, 0, 1, 1], [], []>} : vector<8x256xf32>, vector<256x256xf32>, vector<8x256xf32> -> vector<8x256xf32>
    %11 = arith.subf %8, %10 : vector<8x256xf32>
    %12 = arith.mulf %11, %11 : vector<8x256xf32>
    %cst_8 = arith.constant dense<0.000000e+00> : vector<8x256xf32>
    %13 = tpu.matmul %12, %9, %cst_8 {dimension_numbers = #tpu.dot_dimension_numbers<[1], [0], [0], [1], [0, 0, 1, 1], [], []>} : vector<8x256xf32>, vector<256x256xf32>, vector<8x256xf32> -> vector<8x256xf32>
    %cst_9 = arith.constant 9.99999974E-6 : f32
    %14 = vector.broadcast %cst_9 : f32 to vector<8x256xf32>
    %15 = arith.addf %13, %14 : vector<8x256xf32>
    %16 = math.rsqrt %15 : vector<8x256xf32>
    %17 = arith.mulf %11, %16 : vector<8x256xf32>
    %c0_10 = arith.constant 0 : index
    %c0_11 = arith.constant 0 : index
    %18 = vector.load %arg7[%c0_10, %c0_11] : memref<1x256xf32, #tpu.memory_space<vmem>>, vector<1x256xf32>
    %19 = vector.broadcast %18 : vector<1x256xf32> to vector<8x256xf32>
    %20 = arith.mulf %17, %19 : vector<8x256xf32>
    %c0_12 = arith.constant 0 : index
    %c0_13 = arith.constant 0 : index
    %21 = vector.load %arg8[%c0_12, %c0_13] : memref<1x256xf32, #tpu.memory_space<vmem>>, vector<1x256xf32>
    %22 = vector.broadcast %21 : vector<1x256xf32> to vector<8x256xf32>
    %23 = arith.addf %20, %22 : vector<8x256xf32>
    %cst_14 = arith.constant 0.000000e+00 : f32
    %24 = vector.broadcast %cst_14 : f32 to vector<8x256xf32>
    %25 = arith.maximumf %23, %24 : vector<8x256xf32>
    %26 = arith.truncf %25 : vector<8x256xf32> to vector<8x256xbf16>
    %c0_15 = arith.constant 0 : index
    %c0_16 = arith.constant 0 : index
    %27 = vector.load %arg4[%c0_15, %c0_16] : memref<256x256xbf16, #tpu.memory_space<vmem>>, vector<256x256xbf16>
    %cst_17 = arith.constant dense<0.000000e+00> : vector<8x256xf32>
    %28 = tpu.matmul %26, %27, %cst_17 {dimension_numbers = #tpu.dot_dimension_numbers<[1], [0], [0], [1], [0, 0, 1, 1], [], []>} : vector<8x256xbf16>, vector<256x256xbf16>, vector<8x256xf32> -> vector<8x256xf32>
    %c0_18 = arith.constant 0 : index
    %c0_19 = arith.constant 0 : index
    %29 = vector.load %arg5[%c0_18, %c0_19] : memref<1x256xf32, #tpu.memory_space<vmem>>, vector<1x256xf32>
    %30 = vector.broadcast %29 : vector<1x256xf32> to vector<8x256xf32>
    %31 = arith.addf %28, %30 : vector<8x256xf32>
    %cst_20 = arith.constant dense<0.000000e+00> : vector<8x256xf32>
    %32 = tpu.matmul %31, %9, %cst_20 {dimension_numbers = #tpu.dot_dimension_numbers<[1], [0], [0], [1], [0, 0, 1, 1], [], []>} : vector<8x256xf32>, vector<256x256xf32>, vector<8x256xf32> -> vector<8x256xf32>
    %33 = arith.subf %31, %32 : vector<8x256xf32>
    %34 = arith.mulf %33, %33 : vector<8x256xf32>
    %cst_21 = arith.constant dense<0.000000e+00> : vector<8x256xf32>
    %35 = tpu.matmul %34, %9, %cst_21 {dimension_numbers = #tpu.dot_dimension_numbers<[1], [0], [0], [1], [0, 0, 1, 1], [], []>} : vector<8x256xf32>, vector<256x256xf32>, vector<8x256xf32> -> vector<8x256xf32>
    %cst_22 = arith.constant 9.99999974E-6 : f32
    %36 = vector.broadcast %cst_22 : f32 to vector<8x256xf32>
    %37 = arith.addf %35, %36 : vector<8x256xf32>
    %38 = math.rsqrt %37 : vector<8x256xf32>
    %39 = arith.mulf %33, %38 : vector<8x256xf32>
    %c0_23 = arith.constant 0 : index
    %c0_24 = arith.constant 0 : index
    %40 = vector.load %arg9[%c0_23, %c0_24] : memref<1x256xf32, #tpu.memory_space<vmem>>, vector<1x256xf32>
    %41 = vector.broadcast %40 : vector<1x256xf32> to vector<8x256xf32>
    %42 = arith.mulf %39, %41 : vector<8x256xf32>
    %c0_25 = arith.constant 0 : index
    %c0_26 = arith.constant 0 : index
    %43 = vector.load %arg10[%c0_25, %c0_26] : memref<1x256xf32, #tpu.memory_space<vmem>>, vector<1x256xf32>
    %44 = vector.broadcast %43 : vector<1x256xf32> to vector<8x256xf32>
    %45 = arith.addf %42, %44 : vector<8x256xf32>
    %46 = arith.addf %45, %7 : vector<8x256xf32>
    %c0_27 = arith.constant 0 : index
    %c0_28 = arith.constant 0 : index
    %47 = vector.load %arg11[%c0_27, %c0_28] : memref<8x256xf32, #tpu.memory_space<vmem>>, vector<8x256xf32>
    tpu.vector_store %arg11[%c0_27, %c0_28], %46 {strides = array<i32>} : memref<8x256xf32, #tpu.memory_space<vmem>>, vector<8x256xf32>,
    return
  }
  func.func @transform_0(%arg0: i32) -> (i32, i32) {
    %c0_i32 = arith.constant 0 : i32
    %c0_i32_0 = arith.constant 0 : i32
    return %arg0, %c0_i32 : i32, i32
  }
  func.func @transform_1(%arg0: i32) -> (i32, i32) {
    %c0_i32 = arith.constant 0 : i32
    %c0_i32_0 = arith.constant 0 : i32
    %c0_i32_1 = arith.constant 0 : i32
    return %c0_i32, %c0_i32_0 : i32, i32
  }
  func.func @transform_2(%arg0: i32) -> (i32, i32) {
    %c0_i32 = arith.constant 0 : i32
    %c0_i32_0 = arith.constant 0 : i32
    %c0_i32_1 = arith.constant 0 : i32
    return %c0_i32, %c0_i32_0 : i32, i32
  }
  func.func @transform_3(%arg0: i32) -> (i32, i32) {
    %c0_i32 = arith.constant 0 : i32
    %c0_i32_0 = arith.constant 0 : i32
    %c0_i32_1 = arith.constant 0 : i32
    return %c0_i32, %c0_i32_0 : i32, i32
  }
  func.func @transform_4(%arg0: i32) -> (i32, i32) {
    %c0_i32 = arith.constant 0 : i32
    %c0_i32_0 = arith.constant 0 : i32
    %c0_i32_1 = arith.constant 0 : i32
    return %c0_i32, %c0_i32_0 : i32, i32
  }
  func.func @transform_5(%arg0: i32) -> (i32, i32) {
    %c0_i32 = arith.constant 0 : i32
    %c0_i32_0 = arith.constant 0 : i32
    %c0_i32_1 = arith.constant 0 : i32
    return %c0_i32, %c0_i32_0 : i32, i32
  }
  func.func @transform_6(%arg0: i32) -> (i32, i32) {
    %c0_i32 = arith.constant 0 : i32
    %c0_i32_0 = arith.constant 0 : i32
    %c0_i32_1 = arith.constant 0 : i32
    return %c0_i32, %c0_i32_0 : i32, i32
  }
  func.func @transform_7(%arg0: i32) -> (i32, i32) {
    %c0_i32 = arith.constant 0 : i32
    %c0_i32_0 = arith.constant 0 : i32
    %c0_i32_1 = arith.constant 0 : i32
    return %c0_i32, %c0_i32_0 : i32, i32
  }
  func.func @transform_8(%arg0: i32) -> (i32, i32) {
    %c0_i32 = arith.constant 0 : i32
    %c0_i32_0 = arith.constant 0 : i32
    %c0_i32_1 = arith.constant 0 : i32
    return %c0_i32, %c0_i32_0 : i32, i32
  }
  func.func @transform_9(%arg0: i32) -> (i32, i32) {
    %c0_i32 = arith.constant 0 : i32
    %c0_i32_0 = arith.constant 0 : i32
    %c0_i32_1 = arith.constant 0 : i32
    return %c0_i32, %c0_i32_0 : i32, i32
  }
  func.func @transform_10(%arg0: i32) -> (i32, i32) {
    %c0_i32 = arith.constant 0 : i32
    %c0_i32_0 = arith.constant 0 : i32
    return %arg0, %c0_i32 : i32, i32
  }
}

</mosaic_0001>

<bundles_post_ra>
// kernel: res_layer_forward.1
= control target key start
LH: loop header
LB: loop body
LE: loop exit
PB: predicated region body
PF: predicated region fallthrough
CT: control target
= control target key end

     0   :  { %15 = vsyncpa [#allocation3], 0  ;;  %s1924_s0 = inlined_call_operand.vmem [shape: f32[8,128], index: 0, kind: input, shape index: {}]   ;;  %s1925_s1 = inlined_call_operand.hbm [shape: bf16[128,512], index: 1, kind: input, shape index: {}]   ;;  %s1926_s2 = inlined_call_operand.vmem [shape: f32[1,512], index: 2, kind: input, shape index: {}]   ;;  %s1927_s3 = inlined_call_operand.hbm [shape: bf16[256,256], index: 3, kind: input, shape index: {}]   ;;  %s1928_s4 = inlined_call_operand.vmem [shape: f32[1,256], index: 4, kind: input, shape index: {}]   ;;  %s1929_s5 = inlined_call_operand.hbm [shape: f32[256,256], index: 5, kind: input, shape index: {}]   ;;  %s1930_s6 = inlined_call_operand.vmem [shape: f32[1,256], index: 6, kind: input, shape index: {}]   ;;  %s1931_s7 = inlined_call_operand.vmem [shape: f32[1,256], index: 7, kind: input, shape index: {}]   ;;  %s1932_s8 = inlined_call_operand.vmem [shape: f32[1,256], index: 8, kind: input, shape index: {}]   ;;  %s1933_s9 = inlined_call_operand.vmem [shape: f32[1,256], index: 9, kind: input, shape index: {}]   ;;  %s1934_s10 = inlined_call_operand.vmem [shape: f32[8,256], index: 10, kind: output, shape index: {}]  }
   0x1   :  { %16 = vsyncpa [#allocation5], 0  ;;  %s1556_s13 = smov [#allocation4]   ;;  %s1486_s17 = scalar_lea.hbm %s1927_s3, 4096 }
   0x2   :  { %s38_s14 = sshll.u32 %s1556_s13, 4  ;;  %p1487_p0 = scmp.ne.s32.totalorder %s1927_s3, %s1486_s17  ;;  %s39_s14 = int_to_ptr.vmem [resolvable:$true] %s38_s14 }
   0x3   :  { %p1490_p1 = scmp.lt.u32.totalorder %s1486_s17, %s1927_s3 }
   0x5   :  { %p1492_p2 = pnand %p1490_p1, %p1487_p0 }
   0x7   :  { %1495 = shalt.err (!%p1492_p2)
}
   0x8   :  { %s1496_s22 = scalar_lea.vmem %s39_s14, 4096  ;;  %p1501_p4 = scmp.lt.s32.totalorder %s39_s14, %s39_s14 }
   0x9   :  { %p1497_p3 = scmp.ne.s32.totalorder %s39_s14, %s1496_s22  ;;  %p1502_p5 = scmp.lt.s32.totalorder %s1496_s22, %s1496_s22 }
   0xb   :  { %p1503_p6 = por %p1502_p5, %p1501_p4 }
   0xd   :  { %p1504_p7 = pnand %p1503_p6, %p1497_p3 }
   0xf   :  { %1507 = shalt.err (!%p1504_p7)
}
  0x10   :  { %s1557_s23 = smov 128   ;;  %s1558_s24 = smov 8  }
  0x11   :  { %44 = dma.hbm_to_vmem [thread:$0]  %s1927_s3, 4096, %s39_s14, [#allocation5], %s1557_s23, %s1557_s23, %s1558_s24  }
  0x12   :  { %s1559_s27 = smov [#allocation2]   ;;  %s1508_s11 = scalar_lea.hbm %s1925_s1, 4096 }
  0x13   :  { %s24_s28 = sshll.u32 %s1559_s27, 4  ;;  %p1509_p8 = scmp.ne.s32.totalorder %s1925_s1, %s1508_s11  ;;  %s25_s28 = int_to_ptr.vmem [resolvable:$true] %s24_s28 }
  0x14   :  { %p1512_p9 = scmp.lt.u32.totalorder %s1508_s11, %s1925_s1 }
  0x16   :  { %p1514_p10 = pnand %p1512_p9, %p1509_p8 }
  0x18   :  { %1517 = shalt.err (!%p1514_p10)
}
  0x19   :  { %s1518_s17 = scalar_lea.vmem %s25_s28, 4096  ;;  %p1523_p12 = scmp.lt.s32.totalorder %s25_s28, %s25_s28 }
  0x1a   :  { %p1519_p11 = scmp.ne.s32.totalorder %s25_s28, %s1518_s17  ;;  %p1524_p13 = scmp.lt.s32.totalorder %s1518_s17, %s1518_s17 }
  0x1c   :  { %p1525_p0 = por %p1524_p13, %p1523_p12 }
  0x1e   :  { %p1526_p1 = pnand %p1525_p0, %p1519_p11 }
  0x20   :  { %1529 = shalt.err (!%p1526_p1)
}
  0x21   :  { %s1560_s3 = smov 256   ;;  %s1561_s14 = smov 16  }
  0x22   :  { %30 = dma.hbm_to_vmem [thread:$0]  %s1925_s1, 4096, %s25_s28, [#allocation3], %s1560_s3, %s1560_s3, %s1561_s14  }
  0x23   :  { %s1562_s20 = smov [#allocation6]   ;;  %s1530_s24 = scalar_lea.hbm %s1929_s5, 8192 }
  0x24   :  { %s52_s21 = sshll.u32 %s1562_s20, 4  ;;  %p1531_p2 = scmp.ne.s32.totalorder %s1929_s5, %s1530_s24  ;;  %s53_s21 = int_to_ptr.vmem [resolvable:$true] %s52_s21 }
  0x25   :  { %p1534_p3 = scmp.lt.u32.totalorder %s1530_s24, %s1929_s5 }
  0x27   :  { %p1536_p4 = pnand %p1534_p3, %p1531_p2 }
  0x29   :  { %1539 = shalt.err (!%p1536_p4)
}
  0x2a   :  { %s1540_s30 = scalar_lea.vmem %s53_s21, 8192  ;;  %p1545_p6 = scmp.lt.s32.totalorder %s53_s21, %s53_s21 }
  0x2b   :  { %p1541_p5 = scmp.ne.s32.totalorder %s53_s21, %s1540_s30  ;;  %p1546_p7 = scmp.lt.s32.totalorder %s1540_s30, %s1540_s30 }
  0x2d   :  { %p1547_p8 = por %p1546_p7, %p1545_p6 }
  0x2f   :  { %p1548_p9 = pnand %p1547_p8, %p1541_p5 }
  0x31   :  { %1551 = shalt.err (!%p1548_p9)
}
  0x32   :  { %58 = dma.hbm_to_vmem [thread:$0]  %s1929_s5, 8192, %s53_s21, [#allocation5], %s1560_s3, %s1560_s3, %s1561_s14  }
  0x33   :  { %1552 = dma.done.wait [#allocation3], 4096  }
  0x34   :  { %1553 = vsyncadd [#allocation3], 4294963200 }
  0x35   :  { %1554 = dma.done.wait [#allocation5], 12288  }
  0x36   :  { %1555 = vsyncadd [#allocation5], 4294955008  ;;  %v1563_v0 = vmov 0   ;;  %v1382_v1 = vld [vmem:[#allocation2 + $0x4] ss:$16 sps:$4 sm:$0xff]   ;;  %v376_v15 = vld [vmem:[#allocation6 + $0x8] sm:$0xff] }
  0x37   :  { %325 = vmatprep.mubr.bf16.mxu1 %v1563_v0  ;;  %v1384_v2 = vld [vmem:[#allocation2] ss:$16 sps:$4 sm:$0xff]   ;;  %293 = vmatprep.subr.bf16.mxu1 %v1382_v1  ;;  %v1385_v3 = vld [vmem:[#allocation2 + $0x24] ss:$16 sps:$4 sm:$0xff]   ;;  %v378_v17 = vld [vmem:[#allocation6 + $0x18] sm:$0xff] }
  0x38   :  { %294 = vmatpush1.bf16.msra.mxu1 %v1384_v2  ;;  %v1387_v4 = vld [vmem:[#allocation2 + $0x20] ss:$16 sps:$4 sm:$0xff]   ;;  %v1388_v5 = vld [vmem:[#allocation2 + $0x44] ss:$16 sps:$4 sm:$0xff]   ;;  %v1656_v20 = vpack.c.bf16 %v378_v17, %v376_v15  ;;  %v380_v22 = vld [vmem:[#allocation6 + $0x28] sm:$0xff] }
  0x39   :  { %295 = vmatprep.subr.bf16.mxu1 %v1385_v3  ;;  %v1390_v6 = vld [vmem:[#allocation2 + $0x40] ss:$16 sps:$4 sm:$0xff]   ;;  %v1391_v7 = vld [vmem:[#allocation2 + $0x64] ss:$16 sps:$4 sm:$0xff]   ;;  %v382_v23 = vld [vmem:[#allocation6 + $0x38] sm:$0xff] }
  0x3a   :  { %v1393_v8 = vld [vmem:[#allocation2 + $0x60] ss:$16 sps:$4 sm:$0xff]   ;;  %v1394_v9 = vld [vmem:[#allocation2 + $0x84] ss:$16 sps:$4 sm:$0xff]   ;;  %v1660_v25 = vpack.c.bf16 %v382_v23, %v380_v22  ;;  %v384_v27 = vld [vmem:[#allocation6 + $0x48] sm:$0xff]  ;;  %1119 = vmatprep.subr.bf16.mxu0 %v1656_v20 }
  0x3b   :  { %v1396_v10 = vld [vmem:[#allocation2 + $0x80] ss:$16 sps:$4 sm:$0xff]   ;;  %v1397_v11 = vld [vmem:[#allocation2 + $0xa4] ss:$16 sps:$4 sm:$0xff]   ;;  %v386_v28 = vld [vmem:[#allocation6 + $0x58] sm:$0xff] }
  0x3c   :  { %296 = vmatpush1.bf16.msra.mxu1 %v1387_v4  ;;  %v1399_v12 = vld [vmem:[#allocation2 + $0xa0] ss:$16 sps:$4 sm:$0xff]   ;;  %v1400_v13 = vld [vmem:[#allocation2 + $0xc4] ss:$16 sps:$4 sm:$0xff]   ;;  %v1670_v32 = vpack.c.bf16 %v386_v28, %v384_v27  ;;  %v1408_v35 = vld [vmem:[#allocation2 + $0xc] ss:$16 sps:$4 sm:$0xff]  }
  0x3d   :  { %297 = vmatprep.subr.bf16.mxu1 %v1388_v5  ;;  %v1402_v14 = vld [vmem:[#allocation2 + $0xc0] ss:$16 sps:$4 sm:$0xff]   ;;  %v1403_v16 = vld [vmem:[#allocation2 + $0xe4] ss:$16 sps:$4 sm:$0xff]   ;;  %v1406_v36 = vld [vmem:[#allocation2 + $0x8] ss:$16 sps:$4 sm:$0xff]  }
  0x3e   :  { %v375_v18 = vld [vmem:[#allocation6] sm:$0xff]  ;;  %v377_v19 = vld [vmem:[#allocation6 + $0x10] sm:$0xff]  ;;  %v388_v37 = vld [vmem:[#allocation6 + $0x68] sm:$0xff] }
  0x3f   :  { %v1658_v21 = vpack.c.bf16 %v377_v19, %v375_v18  ;;  %v379_v24 = vld [vmem:[#allocation6 + $0x20] sm:$0xff]  ;;  %v381_v26 = vld [vmem:[#allocation6 + $0x30] sm:$0xff]  ;;  %v390_v38 = vld [vmem:[#allocation6 + $0x78] sm:$0xff] }
  0x40   :  { %298 = vmatpush1.bf16.msra.mxu1 %v1390_v6  ;;  %v1405_v29 = vld [vmem:[#allocation2 + $0xe0] ss:$16 sps:$4 sm:$0xff]   ;;  %v1664_v30 = vpack.c.bf16 %v381_v26, %v379_v24  ;;  %v1411_v40 = vld [vmem:[#allocation2 + $0x2c] ss:$16 sps:$4 sm:$0xff]   ;;  %v1678_v46 = vpack.c.bf16 %v390_v38, %v388_v37  ;;  %v1409_v47 = vld [vmem:[#allocation2 + $0x28] ss:$16 sps:$4 sm:$0xff]  }
  0x41   :  { %299 = vmatprep.subr.bf16.mxu1 %v1391_v7  ;;  %1121 = vmatpush1.bf16.msra.mxu0 %v1658_v21  ;;  %v77_v31 = vld [vmem:[%s1924_s0] sm:$0xff]  ;;  %v385_v34 = vld [vmem:[#allocation6 + $0x50] sm:$0xff]  ;;  %v392_v44 = vld [vmem:[#allocation6 + $0x88] sm:$0xff] }
  0x42   :  { %1123 = vmatprep.subr.bf16.mxu0 %v1660_v25  ;;  %v383_v33 = vld [vmem:[#allocation6 + $0x40] sm:$0xff]  ;;  %v1672_v39 = vpack.c.bf16 %v77_v31, %v77_v31  ;;  %v389_v43 = vld [vmem:[#allocation6 + $0x70] sm:$0xff]  ;;  %v394_v45 = vld [vmem:[#allocation6 + $0x98] sm:$0xff] }
  0x43   :  { %v1675_v41 = vpack.c.bf16 %v385_v34, %v383_v33  ;;  %v387_v42 = vld [vmem:[#allocation6 + $0x60] sm:$0xff]  ;;  %v393_v49 = vld [vmem:[#allocation6 + $0x90] sm:$0xff]  ;;  %v1414_v50 = vld [vmem:[#allocation2 + $0x4c] ss:$16 sps:$4 sm:$0xff]   ;;  %v1685_v54 = vpack.c.bf16 %v394_v45, %v392_v44 }
  0x44   :  { %300 = vmatpush1.bf16.msra.mxu1 %v1393_v8  ;;  %v391_v48 = vld [vmem:[#allocation6 + $0x80] sm:$0xff]  ;;  %v1682_v51 = vpack.c.bf16 %v389_v43, %v387_v42  ;;  %v396_v52 = vld [vmem:[#allocation6 + $0xa8] sm:$0xff]  ;;  %v398_v53 = vld [vmem:[#allocation6 + $0xb8] sm:$0xff] }
  0x45   :  { %301 = vmatprep.subr.bf16.mxu1 %v1394_v9  ;;  %1125 = vmatpush1.bf16.msra.mxu0 %v1664_v30  ;;  %v1412_v55 = vld [vmem:[#allocation2 + $0x48] ss:$16 sps:$4 sm:$0xff]   ;;  %v395_v56 = vld [vmem:[#allocation6 + $0xa0] sm:$0xff]  ;;  %v397_v57 = vld [vmem:[#allocation6 + $0xb0] sm:$0xff]  ;;  %v1689_v59 = vpack.c.bf16 %v393_v49, %v391_v48  ;;  %v1692_v62 = vpack.c.bf16 %v398_v53, %v396_v52 }
  0x46   :  { %1127 = vmatprep.subr.bf16.mxu0 %v1670_v32  ;;  %v1417_v58 = vld [vmem:[#allocation2 + $0x6c] ss:$16 sps:$4 sm:$0xff]   ;;  %v1695_v63 = vpack.c.bf16 %v397_v57, %v395_v56  ;;  %v399_v2 = vld [vmem:[#allocation6 + $0xc0] sm:$0xff]  ;;  %v401_v3 = vld [vmem:[#allocation6 + $0xd0] sm:$0xff] }
  0x47   :  { %v400_v60 = vld [vmem:[#allocation6 + $0xc8] sm:$0xff]  ;;  %v402_v61 = vld [vmem:[#allocation6 + $0xd8] sm:$0xff]  ;;  %v1701_v5 = vpack.c.bf16 %v401_v3, %v399_v2  ;;  %v405_v17 = vld [vmem:[#allocation6 + $0xf0] sm:$0xff] }
  0x48   :  { %302 = vmatpush1.bf16.msra.mxu1 %v1396_v10  ;;  %v1698_v1 = vpack.c.bf16 %v402_v61, %v400_v60  ;;  %v1420_v4 = vld [vmem:[#allocation2 + $0x8c] ss:$16 sps:$4 sm:$0xff]   ;;  %v1418_v6 = vld [vmem:[#allocation2 + $0x88] ss:$16 sps:$4 sm:$0xff]   ;;  %v407_v24 = vld [vmem:[#allocation6 + $0x100] sm:$0xff] }
  0x49   :  { %303 = vmatprep.subr.bf16.mxu1 %v1397_v11  ;;  %1129 = vmatpush1.bf16.msra.mxu0 %v1675_v41  ;;  %v1423_v7 = vld [vmem:[#allocation2 + $0xac] ss:$16 sps:$4 sm:$0xff]   ;;  %v1421_v8 = vld [vmem:[#allocation2 + $0xa8] ss:$16 sps:$4 sm:$0xff]   ;;  %v409_v26 = vld [vmem:[#allocation6 + $0x110] sm:$0xff] }
  0x4a   :  { %1131 = vmatprep.subr.bf16.mxu0 %v1678_v46  ;;  %v1426_v9 = vld [vmem:[#allocation2 + $0xcc] ss:$16 sps:$4 sm:$0xff]   ;;  %v1424_v10 = vld [vmem:[#allocation2 + $0xc8] ss:$16 sps:$4 sm:$0xff]   ;;  %v1730_v28 = vpack.c.bf16 %v409_v26, %v407_v24  ;;  %v411_v31 = vld [vmem:[#allocation6 + $0x120] sm:$0xff] }
  0x4b   :  { %v1429_v11 = vld [vmem:[#allocation2 + $0xec] ss:$16 sps:$4 sm:$0xff]   ;;  %v413_v33 = vld [vmem:[#allocation6 + $0x130] sm:$0xff] }
  0x4c   :  { %304 = vmatpush1.bf16.msra.mxu1 %v1399_v12  ;;  %v1427_v12 = vld [vmem:[#allocation2 + $0xe8] ss:$16 sps:$4 sm:$0xff]   ;;  %v1737_v37 = vpack.c.bf16 %v413_v33, %v411_v31  ;;  %v421_v48 = vld [vmem:[#allocation6 + $0x170] sm:$0xff] }
  0x4d   :  { %305 = vmatprep.subr.bf16.mxu1 %v1400_v13  ;;  %1133 = vmatpush1.bf16.msra.mxu0 %v1682_v51  ;;  %v404_v13 = vld [vmem:[#allocation6 + $0xe8] sm:$0xff]  ;;  %v410_v22 = vld [vmem:[#allocation6 + $0x118] sm:$0xff]  ;;  %v425_v56 = vld [vmem:[#allocation6 + $0x190] sm:$0xff] }
  0x4e   :  { %1135 = vmatprep.subr.bf16.mxu0 %v1685_v54  ;;  %v408_v19 = vld [vmem:[#allocation6 + $0x108] sm:$0xff]  ;;  %v422_v43 = vld [vmem:[#allocation6 + $0x178] sm:$0xff]  ;;  %v429_v2 = vld [vmem:[#allocation6 + $0x1b0] sm:$0xff] }
  0x4f   :  { %v1728_v23 = vpack.c.bf16 %v410_v22, %v408_v19  ;;  %v412_v27 = vld [vmem:[#allocation6 + $0x128] sm:$0xff] }
  0x50   :  { %306 = vmatpush1.bf16.msra.mxu1 %v1402_v14  ;;  %v406_v14 = vld [vmem:[#allocation6 + $0xf8] sm:$0xff]  ;;  %v420_v42 = vld [vmem:[#allocation6 + $0x168] sm:$0xff] }
  0x51   :  { %307 = vmatprep.subr.bf16.mxu1 %v1403_v16  ;;  %1137 = vmatpush1.bf16.msra.mxu0 %v1689_v59  ;;  %v1720_v15 = vpack.c.bf16 %v406_v14, %v404_v13  ;;  %v403_v16 = vld [vmem:[#allocation6 + $0xe0] sm:$0xff]  ;;  %v1749_v45 = vpack.c.bf16 %v422_v43, %v420_v42  ;;  %v424_v49 = vld [vmem:[#allocation6 + $0x188] sm:$0xff] }
  0x52   :  { %1139 = vmatprep.subr.bf16.mxu0 %v1692_v62  ;;  %v1722_v18 = vpack.c.bf16 %v405_v17, %v403_v16  ;;  %v428_v57 = vld [vmem:[#allocation6 + $0x1a8] sm:$0xff]  ;;  %v435_v14 = vld [vmem:[#allocation6 + $0x1e0] sm:$0xff]  ;;  %v437_v16 = vld [vmem:[#allocation6 + $0x1f0] sm:$0xff] }
  0x53   :  { %v432_v3 = vld [vmem:[#allocation6 + $0x1c8] sm:$0xff]  ;;  %v1786_v17 = vpack.c.bf16 %v437_v16, %v435_v14  ;;  %v1453_v16 = vld [vmem:[#allocation4 + $0x74] ss:$8 sps:$4 sm:$0xff]  }
  0x54   :  { %308 = vmatpush1.bf16.msra.mxu1 %v1405_v29  ;;  %v414_v29 = vld [vmem:[#allocation6 + $0x138] sm:$0xff]  ;;  %v1448_v14 = vld [vmem:[#allocation4 + $0x60] ss:$8 sps:$4 sm:$0xff]  }
  0x55   :  { %334 = vmatprep.subr.bf16.mxu1 %v1408_v35  ;;  %1141 = vmatpush1.bf16.msra.mxu0 %v1695_v63  ;;  %v1733_v34 = vpack.c.bf16 %v414_v29, %v412_v27  ;;  %v416_v35 = vld [vmem:[#allocation6 + $0x148] sm:$0xff]  ;;  %v113_v27 = vlaneseq }
  0x56   :  { %1143 = vmatprep.subr.bf16.mxu0 %v1698_v1 }
  0x57   :  { %326 = vmatmul.mubr.bf16.vlgmr.msra.gmra.mrb[0].mxu1 %v1672_v39  ;;  %v1797_v29 = vshrl.u32 %v113_v27, 7  ;;  %v1454_v27 = vld [vmem:[#allocation4 + $0x80] ss:$8 sps:$4 sm:$0xff]  }
  0x58   :  { %335 = vmatpush1.bf16.msra.mxu1 %v1406_v36  ;;  %366 = vmatprep.mubr.bf16.mxu1 %v1563_v0  ;;  %v1415_v0 = vld [vmem:[#allocation2 + $0x68] ss:$16 sps:$4 sm:$0xff]  }
  0x59   :  { %336 = vmatprep.subr.bf16.mxu1 %v1411_v40  ;;  %1145 = vmatpush1.bf16.msra.mxu0 %v1701_v5  ;;  %v418_v36 = vld [vmem:[#allocation6 + $0x158] sm:$0xff]  ;;  %v417_v40 = vld [vmem:[#allocation6 + $0x150] sm:$0xff]  ;;  %v127_v31 = vsub.s32 3, %v1797_v29  ;;  %v123_v33 = vsub.s32 2, %v1797_v29 }
  0x5a   :  { %1147 = vmatprep.subr.bf16.mxu0 %v1720_v15  ;;  %v1741_v38 = vpack.c.bf16 %v418_v36, %v416_v35  ;;  %v1804_v35 = vld [vmem:[%s1926_s2] sm:$0xf] }
  0x5b   :  { %v128_v36 = vrot.slane %v1804_v35, %v127_v31  ;;  %v1459_v31 = vld [vmem:[#allocation4 + $0x94] ss:$8 sps:$4 sm:$0xff]  }
  0x5c   :  { %337 = vmatpush1.bf16.msra.mxu1 %v1409_v47  ;;  %v419_v47 = vld [vmem:[#allocation6 + $0x160] sm:$0xff] }
  0x5d   :  { %338 = vmatprep.subr.bf16.mxu1 %v1414_v50  ;;  %1149 = vmatpush1.bf16.msra.mxu0 %v1722_v18  ;;  %v426_v50 = vld [vmem:[#allocation6 + $0x198] sm:$0xff]  ;;  %v1753_v52 = vpack.c.bf16 %v421_v48, %v419_v47 }
  0x5e   :  { %1151 = vmatprep.subr.bf16.mxu0 %v1728_v23  ;;  %v1757_v53 = vpack.c.bf16 %v426_v50, %v424_v49  ;;  %v1430_v50 = vld [vmem:[#allocation4] ss:$8 sps:$4 sm:$0xff]  }
  0x60   :  { %339 = vmatpush1.bf16.msra.mxu1 %v1412_v55  ;;  %v423_v55 = vld [vmem:[#allocation6 + $0x180] sm:$0xff] }
  0x61   :  { %340 = vmatprep.subr.bf16.mxu1 %v1417_v58  ;;  %1153 = vmatpush1.bf16.msra.mxu0 %v1730_v28  ;;  %v430_v58 = vld [vmem:[#allocation6 + $0x1b8] sm:$0xff]  ;;  %v1761_v60 = vpack.c.bf16 %v425_v56, %v423_v55  ;;  %v1432_v55 = vld [vmem:[#allocation4 + $0x4] ss:$8 sps:$4 sm:$0xff]  }
  0x62   :  { %1155 = vmatprep.subr.bf16.mxu0 %v1733_v34  ;;  %v1765_v61 = vpack.c.bf16 %v430_v58, %v428_v57  ;;  %v1435_v56 = vld [vmem:[#allocation4 + $0x14] ss:$8 sps:$4 sm:$0xff]   ;;  %v1433_v57 = vld [vmem:[#allocation4 + $0x10] ss:$8 sps:$4 sm:$0xff]   ;;  %v1438_v58 = vld [vmem:[#allocation4 + $0x24] ss:$8 sps:$4 sm:$0xff]  }
  0x64   :  { %341 = vmatpush1.bf16.msra.mxu1 %v1415_v0  ;;  %v427_v0 = vld [vmem:[#allocation6 + $0x1a0] sm:$0xff] }
  0x65   :  { %342 = vmatprep.subr.bf16.mxu1 %v1420_v4  ;;  %1157 = vmatpush1.bf16.msra.mxu0 %v1737_v37  ;;  %v434_v4 = vld [vmem:[#allocation6 + $0x1d8] sm:$0xff] }
  0x66   :  { %1159 = vmatprep.subr.bf16.mxu0 %v1741_v38 }
  0x68   :  { %343 = vmatpush1.bf16.msra.mxu1 %v1418_v6  ;;  %v1769_v6 = vpack.c.bf16 %v429_v2, %v427_v0  ;;  %v1436_v0 = vld [vmem:[#allocation4 + $0x20] ss:$8 sps:$4 sm:$0xff]   ;;  %v1441_v2 = vld [vmem:[#allocation4 + $0x34] ss:$8 sps:$4 sm:$0xff]  }
  0x69   :  { %344 = vmatprep.subr.bf16.mxu1 %v1423_v7  ;;  %v1773_v7 = vpack.c.bf16 %v434_v4, %v432_v3  ;;  %v1439_v3 = vld [vmem:[#allocation4 + $0x30] ss:$8 sps:$4 sm:$0xff]   ;;  %v1444_v4 = vld [vmem:[#allocation4 + $0x44] ss:$8 sps:$4 sm:$0xff]  }
  0x6c   :  { %345 = vmatpush1.bf16.msra.mxu1 %v1421_v8  ;;  %v431_v8 = vld [vmem:[#allocation6 + $0x1c0] sm:$0xff] }
  0x6d   :  { %346 = vmatprep.subr.bf16.mxu1 %v1426_v9  ;;  %v433_v9 = vld [vmem:[#allocation6 + $0x1d0] sm:$0xff] }
  0x70   :  { %347 = vmatpush1.bf16.msra.mxu1 %v1424_v10  ;;  %v1777_v10 = vpack.c.bf16 %v433_v9, %v431_v8  ;;  %v1442_v8 = vld [vmem:[#allocation4 + $0x40] ss:$8 sps:$4 sm:$0xff]   ;;  %v1447_v9 = vld [vmem:[#allocation4 + $0x54] ss:$8 sps:$4 sm:$0xff]  }
  0x71   :  { %348 = vmatprep.subr.bf16.mxu1 %v1429_v11  ;;  %v436_v11 = vld [vmem:[#allocation6 + $0x1e8] sm:$0xff] }
  0x74   :  { %349 = vmatpush1.bf16.msra.mxu1 %v1427_v12  ;;  %v438_v12 = vld [vmem:[#allocation6 + $0x1f8] sm:$0xff] }
  0x75   :  { %1183 = vmatprep.subr.bf16.mxu1 %v1656_v20  ;;  %v1784_v13 = vpack.c.bf16 %v438_v12, %v436_v11  ;;  %v1445_v11 = vld [vmem:[#allocation4 + $0x50] ss:$8 sps:$4 sm:$0xff]   ;;  %v1450_v12 = vld [vmem:[#allocation4 + $0x64] ss:$8 sps:$4 sm:$0xff]  }
  0x77   :  { %367 = vmatmul.mubr.bf16.vlgmr.msra.gmra.mrb[4].mxu1 %v1672_v39  ;;  %v415_v39 = vld [vmem:[#allocation6 + $0x140] sm:$0xff] }
  0x78   :  { %1185 = vmatpush1.bf16.msra.mxu1 %v1658_v21  ;;  %v1745_v44 = vpack.c.bf16 %v417_v40, %v415_v39  ;;  %v124_v39 = vrot.slane %v1804_v35, %v123_v33  ;;  %v1457_v33 = vld [vmem:[#allocation4 + $0x90] ss:$8 sps:$4 sm:$0xff]  }
  0x79   :  { %1187 = vmatprep.subr.bf16.mxu1 %v1660_v25 }
  0x7a   :  { %1161 = vmatpush1.bf16.msra.mxu0 %v1745_v44 }
  0x7b   :  { %1163 = vmatprep.subr.bf16.mxu0 %v1749_v45 }
  0x7c   :  { %1189 = vmatpush1.bf16.msra.mxu1 %v1664_v30 }
  0x7d   :  { %1191 = vmatprep.subr.bf16.mxu1 %v1670_v32 }
  0x7e   :  { %1165 = vmatpush1.bf16.msra.mxu0 %v1753_v52 }
  0x7f   :  { %1167 = vmatprep.subr.bf16.mxu0 %v1757_v53 }
  0x80   :  { %1193 = vmatpush1.bf16.msra.mxu1 %v1675_v41 }
  0x81   :  { %1195 = vmatprep.subr.bf16.mxu1 %v1678_v46 }
  0x82   :  { %1169 = vmatpush1.bf16.msra.mxu0 %v1761_v60 }
  0x83   :  { %1171 = vmatprep.subr.bf16.mxu0 %v1765_v61 }
  0x84   :  { %1197 = vmatpush1.bf16.msra.mxu1 %v1682_v51 }
  0x85   :  { %1199 = vmatprep.subr.bf16.mxu1 %v1685_v54 }
  0x86   :  { %1173 = vmatpush1.bf16.msra.mxu0 %v1769_v6 }
  0x87   :  { %1175 = vmatprep.subr.bf16.mxu0 %v1773_v7 }
  0x88   :  { %1201 = vmatpush1.bf16.msra.mxu1 %v1689_v59 }
  0x89   :  { %1203 = vmatprep.subr.bf16.mxu1 %v1692_v62 }
  0x8a   :  { %1177 = vmatpush1.bf16.msra.mxu0 %v1777_v10 }
  0x8b   :  { %1179 = vmatprep.subr.bf16.mxu0 %v1784_v13 }
  0x8c   :  { %1205 = vmatpush1.bf16.msra.mxu1 %v1695_v63 }
  0x8d   :  { %1207 = vmatprep.subr.bf16.mxu1 %v1698_v1 }
  0x8e   :  { %1181 = vmatpush1.bf16.msra.mxu0 %v1786_v17 }
  0x8f   :  { %825 = vmatprep.subr.bf16.mxu0 %v1432_v55  ;;  %v1463_v55 = vld [vmem:[#allocation4 + $0xb0] ss:$8 sps:$4 sm:$0xff]  }
  0x90   :  { %1209 = vmatpush1.bf16.msra.mxu1 %v1701_v5 }
  0x91   :  { %1211 = vmatprep.subr.bf16.mxu1 %v1720_v15 }
  0x94   :  { %1213 = vmatpush1.bf16.msra.mxu1 %v1722_v18 }
  0x95   :  { %1215 = vmatprep.subr.bf16.mxu1 %v1728_v23 }
  0x98   :  { %1217 = vmatpush1.bf16.msra.mxu1 %v1730_v28 }
  0x99   :  { %1219 = vmatprep.subr.bf16.mxu1 %v1733_v34 }
  0x9c   :  { %1221 = vmatpush1.bf16.msra.mxu1 %v1737_v37 }
  0x9d   :  { %1223 = vmatprep.subr.bf16.mxu1 %v1741_v38 }
  0xa0   :  { %1225 = vmatpush1.bf16.msra.mxu1 %v1745_v44 }
  0xa1   :  { %1227 = vmatprep.subr.bf16.mxu1 %v1749_v45 }
  0xa4   :  { %1229 = vmatpush1.bf16.msra.mxu1 %v1753_v52 }
  0xa5   :  { %1231 = vmatprep.subr.bf16.mxu1 %v1757_v53 }
  0xa8   :  { %1233 = vmatpush1.bf16.msra.mxu1 %v1761_v60 }
  0xa9   :  { %1235 = vmatprep.subr.bf16.mxu1 %v1765_v61 }
  0xac   :  { %1237 = vmatpush1.bf16.msra.mxu1 %v1769_v6 }
  0xad   :  { %1239 = vmatprep.subr.bf16.mxu1 %v1773_v7 }
  0xb0   :  { %1241 = vmatpush1.bf16.msra.mxu1 %v1777_v10 }
  0xb1   :  { %1243 = vmatprep.subr.bf16.mxu1 %v1784_v13 }
  0xb4   :  { %1245 = vmatpush1.bf16.msra.mxu1 %v1786_v17 }
  0xb5   :  { %1247 = vmatprep.subr.bf16.mxu1 %v1656_v20 }
 0x12a   :  { %v1793_v19 = vpop.f32.mrb[0].mxu1 }
 0x12b   :  { %v1795_v22 = vpop.f32.mrb[1].mxu1 }
 0x12c   :  { %v331_v24 = vpop.f32.mrb[2].mxu1 }
 0x12d   :  { %v332_v26 = vpop.f32.mrb[3].mxu1  ;;  %v1451_v24 = vld [vmem:[#allocation4 + $0x70] ss:$8 sps:$4 sm:$0xff]  }
 0x12e   :  { %v1456_v26 = vld [vmem:[#allocation4 + $0x84] ss:$8 sps:$4 sm:$0xff]  }
 0x14a   :  { %v368_v40 = vpop.f32.mrb[4].mxu1 }
 0x14b   :  { %v370_v42 = vpop.f32.mrb[5].mxu1  ;;  %v369_v48 = vadd.f32 %v368_v40, %v124_v39 }
 0x14c   :  { %v371_v43 = vadd.f32 %v370_v42, %v128_v36  ;;  %v372_v47 = vpop.f32.mrb[6].mxu1 }
 0x14d   :  { %v373_v49 = vpop.f32.mrb[7].mxu1 }
 0x14e   :  { %503 = vmatprep.mubr.f32.mxu0 %v371_v43 }
 0x14f   :  { %504 = vmatmul.mubr.f32.vlgmr.msra.gmra.mrb[0].mxu0 %v369_v48 }
 0x150   :  { %826 = vmatpush1.bf16.msra.mxu0 %v1430_v50  ;;  %v1465_v50 = vld [vmem:[#allocation4 + $0xb4] ss:$8 sps:$4 sm:$0xff]  }
 0x151   :  { %827 = vmatprep.subr.bf16.mxu0 %v1435_v56  ;;  %v1468_v56 = vld [vmem:[#allocation4 + $0xc4] ss:$8 sps:$4 sm:$0xff]  }
 0x154   :  { %828 = vmatpush1.bf16.msra.mxu0 %v1433_v57  ;;  %v1466_v57 = vld [vmem:[#allocation4 + $0xc0] ss:$8 sps:$4 sm:$0xff]  }
 0x155   :  { %829 = vmatprep.subr.bf16.mxu0 %v1438_v58  ;;  %v1471_v58 = vld [vmem:[#allocation4 + $0xd4] ss:$8 sps:$4 sm:$0xff]  }
 0x158   :  { %830 = vmatpush1.bf16.msra.mxu0 %v1436_v0  ;;  %v1469_v0 = vld [vmem:[#allocation4 + $0xd0] ss:$8 sps:$4 sm:$0xff]  }
 0x159   :  { %831 = vmatprep.subr.bf16.mxu0 %v1441_v2  ;;  %v1474_v2 = vld [vmem:[#allocation4 + $0xe4] ss:$8 sps:$4 sm:$0xff]  }
 0x15c   :  { %832 = vmatpush1.bf16.msra.mxu0 %v1439_v3  ;;  %v1472_v3 = vld [vmem:[#allocation4 + $0xe0] ss:$8 sps:$4 sm:$0xff]  }
 0x15d   :  { %833 = vmatprep.subr.bf16.mxu0 %v1444_v4  ;;  %v1477_v4 = vld [vmem:[#allocation4 + $0xf4] ss:$8 sps:$4 sm:$0xff]  }
 0x160   :  { %834 = vmatpush1.bf16.msra.mxu0 %v1442_v8  ;;  %v1475_v8 = vld [vmem:[#allocation4 + $0xf0] ss:$8 sps:$4 sm:$0xff]  }
 0x161   :  { %835 = vmatprep.subr.bf16.mxu0 %v1447_v9 }
 0x164   :  { %836 = vmatpush1.bf16.msra.mxu0 %v1445_v11 }
 0x165   :  { %837 = vmatprep.subr.bf16.mxu0 %v1450_v12 }
 0x168   :  { %838 = vmatpush1.bf16.msra.mxu0 %v1448_v14 }
 0x169   :  { %839 = vmatprep.subr.bf16.mxu0 %v1453_v16  ;;  %v589_v16 = vld [vmem:[%s1930_s6] sm:$0x3] }
 0x16c   :  { %840 = vmatpush1.bf16.msra.mxu0 %v1451_v24  ;;  %v1852_v24 = vsub.s32 0, %v1797_v29 }
 0x16d   :  { %841 = vmatprep.subr.bf16.mxu0 %v1456_v26  ;;  %v1855_v26 = vsub.s32 1, %v1797_v29 }
 0x170   :  { %842 = vmatpush1.bf16.msra.mxu0 %v1454_v27  ;;  %v594_v27 = vrot.slane %v589_v16, %v1852_v24 }
 0x171   :  { %843 = vmatprep.subr.bf16.mxu0 %v1459_v31 }
 0x174   :  { %844 = vmatpush1.bf16.msra.mxu0 %v1457_v33  ;;  %v598_v33 = vrot.slane %v589_v16, %v1855_v26 }
 0x222   :  { %v505_v36 = vpop.f32.mrb[0].mxu0 }
 0x223   :  { %v1808_v39 = vsub.f32 %v369_v48, %v505_v36  ;;  %v507_v40 = vpop.f32.mrb[1].mxu0  ;;  %v1460_v48 = vld [vmem:[#allocation4 + $0xa0] ss:$8 sps:$4 sm:$0xff]  }
 0x224   :  { %v1810_v42 = vsub.f32 %v371_v43, %v507_v40  ;;  %v1462_v43 = vld [vmem:[#allocation4 + $0xa4] ss:$8 sps:$4 sm:$0xff]  }
 0x225   :  { %v512_v49 = vmul.f32 %v1808_v39, %v1808_v39  ;;  %845 = vmatprep.subr.bf16.mxu0 %v1462_v43 }
 0x226   :  { %v513_v47 = vmul.f32 %v1810_v42, %v1810_v42  ;;  %846 = vmatpush1.bf16.msra.mxu0 %v1460_v48 }
 0x227   :  { %847 = vmatprep.subr.bf16.mxu0 %v1465_v50 }
 0x228   :  { %578 = vmatprep.mubr.f32.mxu1 %v513_v47 }
 0x229   :  { %579 = vmatmul.mubr.f32.vlgmr.msra.gmra.mrb[8].mxu1 %v512_v49 }
 0x22a   :  { %1249 = vmatpush1.bf16.msra.mxu1 %v1658_v21  ;;  %848 = vmatpush1.bf16.msra.mxu0 %v1463_v55 }
 0x22b   :  { %1251 = vmatprep.subr.bf16.mxu1 %v1660_v25  ;;  %849 = vmatprep.subr.bf16.mxu0 %v1468_v56 }
 0x22e   :  { %1253 = vmatpush1.bf16.msra.mxu1 %v1664_v30  ;;  %850 = vmatpush1.bf16.msra.mxu0 %v1466_v57 }
 0x22f   :  { %1255 = vmatprep.subr.bf16.mxu1 %v1670_v32  ;;  %851 = vmatprep.subr.bf16.mxu0 %v1471_v58 }
 0x232   :  { %1257 = vmatpush1.bf16.msra.mxu1 %v1675_v41  ;;  %852 = vmatpush1.bf16.msra.mxu0 %v1469_v0 }
 0x233   :  { %1259 = vmatprep.subr.bf16.mxu1 %v1678_v46  ;;  %853 = vmatprep.subr.bf16.mxu0 %v1474_v2 }
 0x236   :  { %1261 = vmatpush1.bf16.msra.mxu1 %v1682_v51  ;;  %854 = vmatpush1.bf16.msra.mxu0 %v1472_v3 }
 0x237   :  { %1263 = vmatprep.subr.bf16.mxu1 %v1685_v54  ;;  %855 = vmatprep.subr.bf16.mxu0 %v1477_v4 }
 0x23a   :  { %1265 = vmatpush1.bf16.msra.mxu1 %v1689_v59  ;;  %856 = vmatpush1.bf16.msra.mxu0 %v1475_v8 }
 0x23b   :  { %1267 = vmatprep.subr.bf16.mxu1 %v1692_v62  ;;  %1311 = vmatprep.subr.bf16.mxu0 %v1656_v20  ;;  %v603_v20 = vld [vmem:[%s1931_s7] sm:$0x3] }
 0x23c   :  { %v608_v47 = vrot.slane %v603_v20, %v1852_v24  ;;  %v612_v43 = vrot.slane %v603_v20, %v1855_v26 }
 0x23e   :  { %1269 = vmatpush1.bf16.msra.mxu1 %v1695_v63 }
 0x23f   :  { %1271 = vmatprep.subr.bf16.mxu1 %v1698_v1 }
 0x242   :  { %1273 = vmatpush1.bf16.msra.mxu1 %v1701_v5 }
 0x243   :  { %1275 = vmatprep.subr.bf16.mxu1 %v1720_v15 }
 0x246   :  { %1277 = vmatpush1.bf16.msra.mxu1 %v1722_v18 }
 0x247   :  { %1279 = vmatprep.subr.bf16.mxu1 %v1728_v23 }
 0x24a   :  { %1281 = vmatpush1.bf16.msra.mxu1 %v1730_v28 }
 0x24b   :  { %1283 = vmatprep.subr.bf16.mxu1 %v1733_v34 }
 0x24e   :  { %1285 = vmatpush1.bf16.msra.mxu1 %v1737_v37 }
 0x24f   :  { %1287 = vmatprep.subr.bf16.mxu1 %v1741_v38 }
 0x252   :  { %1289 = vmatpush1.bf16.msra.mxu1 %v1745_v44 }
 0x253   :  { %1291 = vmatprep.subr.bf16.mxu1 %v1749_v45 }
 0x256   :  { %1293 = vmatpush1.bf16.msra.mxu1 %v1753_v52 }
 0x257   :  { %1295 = vmatprep.subr.bf16.mxu1 %v1757_v53 }
 0x25a   :  { %1297 = vmatpush1.bf16.msra.mxu1 %v1761_v60 }
 0x25b   :  { %1299 = vmatprep.subr.bf16.mxu1 %v1765_v61 }
 0x25e   :  { %1301 = vmatpush1.bf16.msra.mxu1 %v1769_v6 }
 0x25f   :  { %1303 = vmatprep.subr.bf16.mxu1 %v1773_v7 }
 0x262   :  { %1305 = vmatpush1.bf16.msra.mxu1 %v1777_v10 }
 0x263   :  { %1307 = vmatprep.subr.bf16.mxu1 %v1784_v13 }
 0x266   :  { %1309 = vmatpush1.bf16.msra.mxu1 %v1786_v17 }
 0x2fc   :  { %v580_v9 = vpop.f32.mrb[8].mxu1 }
 0x2fd   :  { %v581_v11 = vadd.f32 1e-05, %v580_v9  ;;  %v582_v12 = vpop.f32.mrb[9].mxu1 }
 0x2fe   :  { %v583_v14 = vadd.f32 1e-05, %v582_v12 }
 0x2ff   :  { %1478 = vrsqrt.f32 %v581_v11 }
 0x300   :  { %1480 = vrsqrt.f32 %v583_v14 }
 0x309   :  { %v1479_v31 = vpop.eup %1478 }
 0x30a   :  { %v1481_v36 = vpop.eup %1480  ;;  %v587_v40 = vmul.f32 %v1479_v31, %v1808_v39 }
 0x30b   :  { %v588_v49 = vmul.f32 %v1481_v36, %v1810_v42 }
 0x30c   :  { %v601_v29 = vmul.f32 %v594_v27, %v587_v40 }
 0x30d   :  { %v602_v48 = vmul.f32 %v598_v33, %v588_v49 }
 0x30e   :  { %v615_v50 = vadd.f32 %v608_v47, %v601_v29 }
 0x30f   :  { %v616_v55 = vadd.f32 %v612_v43, %v602_v48 }
 0x310   :  { %v617_v56 = vmax.f32 %v615_v50, 0.0 }
 0x311   :  { %v618_v57 = vmax.f32 %v616_v55, 0.0 }
 0x312   :  { %v619_v0 = vpack.c.bf16 %v617_v56, %v617_v56 }
 0x313   :  { %v620_v58 = vpack.c.bf16 %v618_v57, %v618_v57 }
 0x315   :  { %857 = vmatprep.mubr.bf16.mxu0 %v620_v58 }
 0x316   :  { %858 = vmatmul.mubr.bf16.vlgmr.msra.gmra.mrb[4].mxu0 %v619_v0 }
 0x317   :  { %1313 = vmatpush1.bf16.msra.mxu0 %v1658_v21  ;;  %v653_v21 = vld [vmem:[%s1928_s4] sm:$0x3] }
 0x318   :  { %1315 = vmatprep.subr.bf16.mxu0 %v1660_v25  ;;  %v662_v25 = vrot.slane %v653_v21, %v1855_v26 }
 0x31b   :  { %1317 = vmatpush1.bf16.msra.mxu0 %v1664_v30  ;;  %v658_v30 = vrot.slane %v653_v21, %v1852_v24 }
 0x31c   :  { %1319 = vmatprep.subr.bf16.mxu0 %v1670_v32 }
 0x31f   :  { %1321 = vmatpush1.bf16.msra.mxu0 %v1675_v41 }
 0x320   :  { %1323 = vmatprep.subr.bf16.mxu0 %v1678_v46 }
 0x323   :  { %1325 = vmatpush1.bf16.msra.mxu0 %v1682_v51 }
 0x324   :  { %1327 = vmatprep.subr.bf16.mxu0 %v1685_v54 }
 0x327   :  { %1329 = vmatpush1.bf16.msra.mxu0 %v1689_v59 }
 0x328   :  { %1331 = vmatprep.subr.bf16.mxu0 %v1692_v62 }
 0x32b   :  { %1333 = vmatpush1.bf16.msra.mxu0 %v1695_v63 }
 0x32c   :  { %1335 = vmatprep.subr.bf16.mxu0 %v1698_v1 }
 0x32f   :  { %1337 = vmatpush1.bf16.msra.mxu0 %v1701_v5 }
 0x330   :  { %1339 = vmatprep.subr.bf16.mxu0 %v1720_v15 }
 0x333   :  { %1341 = vmatpush1.bf16.msra.mxu0 %v1722_v18 }
 0x334   :  { %1343 = vmatprep.subr.bf16.mxu0 %v1728_v23 }
 0x337   :  { %1345 = vmatpush1.bf16.msra.mxu0 %v1730_v28 }
 0x338   :  { %1347 = vmatprep.subr.bf16.mxu0 %v1733_v34 }
 0x33b   :  { %1349 = vmatpush1.bf16.msra.mxu0 %v1737_v37 }
 0x33c   :  { %1351 = vmatprep.subr.bf16.mxu0 %v1741_v38  ;;  %v1016_v38 = vld [vmem:[%s1932_s8] sm:$0x3] }
 0x33f   :  { %1353 = vmatpush1.bf16.msra.mxu0 %v1745_v44  ;;  %v1030_v44 = vld [vmem:[%s1933_s9] sm:$0x3] }
 0x340   :  { %1355 = vmatprep.subr.bf16.mxu0 %v1749_v45  ;;  %v1021_v45 = vrot.slane %v1016_v38, %v1852_v24 }
 0x343   :  { %1357 = vmatpush1.bf16.msra.mxu0 %v1753_v52 }
 0x344   :  { %1359 = vmatprep.subr.bf16.mxu0 %v1757_v53  ;;  %v1025_v53 = vrot.slane %v1016_v38, %v1855_v26 }
 0x347   :  { %1361 = vmatpush1.bf16.msra.mxu0 %v1761_v60 }
 0x348   :  { %1363 = vmatprep.subr.bf16.mxu0 %v1765_v61  ;;  %v116_v61 = vrot.slane %v1804_v35, %v1852_v24 }
 0x34a   :  { %v328_v2 = vadd.f32 %v1793_v19, %v116_v61 }
 0x34b   :  { %1365 = vmatpush1.bf16.msra.mxu0 %v1769_v6 }
 0x34c   :  { %1367 = vmatprep.subr.bf16.mxu0 %v1773_v7  ;;  %v1035_v7 = vrot.slane %v1030_v44, %v1852_v24 }
 0x34f   :  { %1369 = vmatpush1.bf16.msra.mxu0 %v1777_v10  ;;  %v120_v10 = vrot.slane %v1804_v35, %v1855_v26 }
 0x350   :  { %1371 = vmatprep.subr.bf16.mxu0 %v1784_v13 }
 0x351   :  { %v330_v4 = vadd.f32 %v1795_v22, %v120_v10 }
 0x353   :  { %1373 = vmatpush1.bf16.msra.mxu0 %v1786_v17  ;;  %v1039_v17 = vrot.slane %v1030_v44, %v1855_v26 }
 0x3e9   :  { %v859_v32 = vpop.f32.mrb[4].mxu0 }
 0x3ea   :  { %v861_v41 = vpop.f32.mrb[5].mxu0  ;;  %v860_v54 = vadd.f32 %v859_v32, %v658_v30 }
 0x3eb   :  { %v862_v46 = vadd.f32 %v861_v41, %v662_v25  ;;  %v863_v51 = vpop.f32.mrb[6].mxu0 }
 0x3ec   :  { %v864_v59 = vpop.f32.mrb[7].mxu0 }
 0x3ed   :  { %930 = vmatprep.mubr.f32.mxu1 %v862_v46 }
 0x3ee   :  { %931 = vmatmul.mubr.f32.vlgmr.msra.gmra.mrb[10].mxu1 %v860_v54 }
 0x4c1   :  { %v932_v62 = vpop.f32.mrb[10].mxu1 }
 0x4c2   :  { %v937_v63 = vsub.f32 %v860_v54, %v932_v62  ;;  %v934_v1 = vpop.f32.mrb[11].mxu1 }
 0x4c3   :  { %v938_v5 = vsub.f32 %v862_v46, %v934_v1 }
 0x4c4   :  { %v939_v18 = vmul.f32 %v937_v63, %v937_v63 }
 0x4c5   :  { %v940_v15 = vmul.f32 %v938_v5, %v938_v5 }
 0x4c7   :  { %1005 = vmatprep.mubr.f32.mxu0 %v940_v15 }
 0x4c8   :  { %1006 = vmatmul.mubr.f32.vlgmr.msra.gmra.mrb[2].mxu0 %v939_v18 }
 0x59b   :  { %v1007_v23 = vpop.f32.mrb[2].mxu0 }
 0x59c   :  { %v1008_v28 = vadd.f32 1e-05, %v1007_v23  ;;  %v1009_v34 = vpop.f32.mrb[3].mxu0 }
 0x59d   :  { %v1010_v37 = vadd.f32 1e-05, %v1009_v34 }
 0x59e   :  { %1482 = vrsqrt.f32 %v1008_v28 }
 0x59f   :  { %1484 = vrsqrt.f32 %v1010_v37 }
 0x5a8   :  { %v1483_v52 = vpop.eup %1482 }
 0x5a9   :  { %v1485_v60 = vpop.eup %1484  ;;  %v1014_v6 = vmul.f32 %v1483_v52, %v937_v63 }
 0x5aa   :  { %v1015_v13 = vmul.f32 %v1485_v60, %v938_v5 }
 0x5ab   :  { %v1028_v39 = vmul.f32 %v1021_v45, %v1014_v6 }
 0x5ac   :  { %v1029_v42 = vmul.f32 %v1025_v53, %v1015_v13 }
 0x5ad   :  { %v1042_v3 = vadd.f32 %v1035_v7, %v1028_v39 }
 0x5ae   :  { %v1043_v8 = vadd.f32 %v1039_v17, %v1029_v42 }
 0x5af   :  { %v1044_v9 = vadd.f32 %v1042_v3, %v328_v2 }
 0x5b0   :  { %v1045_v11 = vadd.f32 %v1043_v8, %v330_v4 }
 0x5b1   :  { %1046 = vst [vmem:[%s1934_s10] sm:$0xff] %v1044_v9 }
 0x5b2   :  { %1047 = vst [vmem:[%s1934_s10 + $0x8] sm:$0xff] %v1045_v11 }
 0x5b3   :  { %1052 = vsyncpa [#allocation3], 1 }
 0x5b4   :  { %1053 = vsyncpa [#allocation5], 1 }

</bundles_post_ra>
